<compile_context>
chip_gen: v7x
topology: tpu7x:2x2x1
jax: 0.10.0
libtpu: 0.0.40
codegen_flags: <defaults>
</compile_context>

<pallas_src>
import functools

import jax
import jax.numpy as jnp
from jax.experimental import pallas as pl
from jax.experimental.pallas import tpu as pltpu


def _round_up(n: int, m: int) -> int:
    return ((n + m - 1) // m) * m


def _cdiv(a: int, b: int) -> int:
    return (a + b - 1) // b


def dqn_kernel(x_ref, w1_ref, b1_ref, w2_ref, b2_ref, w3_ref, b3_ref, o_ref):
    # x_ref: (tb, input_dim) f32      w1_ref: (input_dim, 128) bf16  b1: (1, 128) f32
    # w2_ref: (128, 128) bf16         b2: (1, 128) f32
    # w3_ref: (128, out_pad) bf16     b3: (1, out_pad) f32
    # o_ref:  (tb, out_pad) f32       (out_pad multiple of 128 -> lane-dense stores)
    x = x_ref[...].astype(jnp.bfloat16)  # cast in-kernel (VPU), not in the wrapper

    h1 = jnp.dot(x, w1_ref[...], preferred_element_type=jnp.float32) + b1_ref[...]
    h1 = jnp.maximum(h1, 0.0).astype(jnp.bfloat16)

    h2 = jnp.dot(h1, w2_ref[...], preferred_element_type=jnp.float32) + b2_ref[...]
    h2 = jnp.maximum(h2, 0.0).astype(jnp.bfloat16)

    o_ref[...] = (
        jnp.dot(h2, w3_ref[...], preferred_element_type=jnp.float32) + b3_ref[...]
    ).astype(o_ref.dtype)


def prepare_params(params):
    """One-time param prep: bf16 weights, f32 biases, lane-dense (128-mult) last layer.

    Call this once after (re)loading/updating weights; do NOT call it per step.
    Returns (prepared_params, output_dim).
    """
    w1, b1, w2, b2, w3, b3 = params
    output_dim = w3.shape[1]
    out_pad = _round_up(output_dim, 128)
    if out_pad != output_dim:
        w3 = jnp.pad(w3, ((0, 0), (0, out_pad - output_dim)))
        b3 = jnp.pad(b3, ((0, 0), (0, out_pad - output_dim)))
    prepared = (
        w1.astype(jnp.bfloat16), b1.astype(jnp.float32),
        w2.astype(jnp.bfloat16), b2.astype(jnp.float32),
        w3.astype(jnp.bfloat16), b3.astype(jnp.float32),
    )
    return prepared, output_dim


@functools.partial(jax.jit, static_argnames=("output_dim", "block_b"))
def dqn_forward(x, prepared, output_dim, block_b=512):
    """Fused DQN forward. x: (batch, input_dim) f32; prepared = prepare_params(...)[0]."""
    w1, b1, w2, b2, w3, b3 = prepared
    batch, input_dim = x.shape
    hidden = w1.shape[1]
    out_pad = w3.shape[1]

    # --- VMEM budgeting (generation-aware conservative: fits v7x's 64 MiB) ----
    vmem_budget = 32 * 1024 * 1024
    # Conservatively assume constant-index weight blocks are double-buffered too.
    weights_bytes = 2 * (
        (input_dim * hidden + hidden * hidden + hidden * out_pad) * 2
        + (2 * hidden + out_pad) * 4
    )
    per_row_bytes = 2 * input_dim * 4 + 2 * out_pad * 4  # double-buffered x/out (f32)
    max_block = max(16, ((vmem_budget - weights_bytes) // per_row_bytes) // 16 * 16)
    block_cap = min(block_b, max_block)

    # --- Batch tiling: minimal padding + >=2 tiles for v7x megacore ----------
    num_tiles = max(1, _cdiv(batch, block_cap))
    if batch >= 256:
        num_tiles = max(num_tiles, 2)
    block_b_eff = _round_up(_cdiv(batch, num_tiles), 16)
    padded_batch = num_tiles * block_b_eff
    if padded_batch != batch:
        x = jnp.pad(x, ((0, padded_batch - batch), (0, 0)))

    grid = (num_tiles,)

    flops = 2 * padded_batch * (input_dim * hidden + hidden * hidden + hidden * out_pad)
    bytes_accessed = (
        padded_batch * input_dim * 4                                     # x (f32 in HBM)
        + padded_batch * out_pad * 4                                     # out (f32)
        + (input_dim * hidden + hidden * hidden + hidden * out_pad) * 2  # weights (bf16)
        + (2 * hidden + out_pad) * 4                                     # biases (f32)
    )

    vmem_limit = int(min(max(weights_bytes + block_b_eff * per_row_bytes + (1 << 20),
                             4 * 1024 * 1024),
                         64 * 1024 * 1024))

    out_padded = pl.pallas_call(
        dqn_kernel,
        out_shape=jax.ShapeDtypeStruct((padded_batch, out_pad), jnp.float32),
        grid=grid,
        in_specs=[
            pl.BlockSpec((block_b_eff, input_dim), lambda i: (i, 0)),  # x tile (f32)
            pl.BlockSpec((input_dim, hidden), lambda i: (0, 0)),       # w1 (resident)
            pl.BlockSpec((1, hidden), lambda i: (0, 0)),               # b1
            pl.BlockSpec((hidden, hidden), lambda i: (0, 0)),          # w2
            pl.BlockSpec((1, hidden), lambda i: (0, 0)),               # b2
            pl.BlockSpec((hidden, out_pad), lambda i: (0, 0)),         # w3 (padded)
            pl.BlockSpec((1, out_pad), lambda i: (0, 0)),              # b3 (padded)
        ],
        out_specs=pl.BlockSpec((block_b_eff, out_pad), lambda i: (i, 0)),
        compiler_params=pltpu.CompilerParams(
            dimension_semantics=("parallel",),
            vmem_limit_bytes=vmem_limit,
        ),
        cost_estimate=pl.CostEstimate(
            flops=flops, transcendentals=0, bytes_accessed=bytes_accessed
        ),
    )(x, w1, b1, w2, b2, w3, b3)

    # Drop batch padding and the zero output columns.
    return out_padded[:batch, :output_dim]


def init_linear_params(key, in_features, out_features):
    """Deterministic init mirroring PyTorch nn.Linear default (uniform +-1/sqrt(fan_in))."""
    kw, kb = jax.random.split(key)
    bound = 1.0 / jnp.sqrt(jnp.float32(in_features))
    # Stored transposed: (in_features, out_features) so the kernel does x @ W.
    w = jax.random.uniform(kw, (in_features, out_features), jnp.float32, -bound, bound)
    b = jax.random.uniform(kb, (1, out_features), jnp.float32, -bound, bound)
    return w, b


def dqn_reference(x, params):
    """Same numerics as the kernel: bf16 MXU operands, f32 accumulate + bias."""
    w1, b1, w2, b2, w3, b3 = params
    xb = x.astype(jnp.bfloat16)
    h1 = jnp.dot(xb, w1.astype(jnp.bfloat16), preferred_element_type=jnp.float32) + b1
    h1 = jnp.maximum(h1, 0.0).astype(jnp.bfloat16)
    h2 = jnp.dot(h1, w2.astype(jnp.bfloat16), preferred_element_type=jnp.float32) + b2
    h2 = jnp.maximum(h2, 0.0).astype(jnp.bfloat16)
    return jnp.dot(h2, w3.astype(jnp.bfloat16), preferred_element_type=jnp.float32) + b3


if __name__ == "__main__":
    key = jax.random.PRNGKey(0)
    k_x, k1, k2, k3 = jax.random.split(key, 4)

    batch = 32
    input_dim = 32     # flattened observation vector
    hidden = 128
    output_dim = 4     # number of discrete actions

    x = jax.random.normal(k_x, (batch, input_dim), jnp.float32)

    w1, b1 = init_linear_params(k1, input_dim, hidden)
    w2, b2 = init_linear_params(k2, hidden, hidden)
    w3, b3 = init_linear_params(k3, hidden, output_dim)
    params = (w1, b1, w2, b2, w3, b3)

    # One-time param prep (cast + pad); reused across every forward call.
    prepared, out_dim = prepare_params(params)

    out = dqn_forward(x, prepared, out_dim)
    out = jax.block_until_ready(out)

    ref = dqn_reference(x, params)
    assert out.shape == (batch, output_dim)
    assert jnp.allclose(out, ref, atol=1e-3, rtol=1e-3), "mismatch vs JAX reference"

    print("KERNEL_OK")
</pallas_src>

<mosaic_0001>
module attributes {stable_mosaic.version = 11 : i64} {
  func.func @dqn_kernel(%arg0: i32, %arg1: memref<32x32xf32, #tpu.memory_space<vmem>>, %arg2: memref<32x128xbf16, #tpu.memory_space<vmem>>, %arg3: memref<1x128xf32, #tpu.memory_space<vmem>>, %arg4: memref<128x128xbf16, #tpu.memory_space<vmem>>, %arg5: memref<1x128xf32, #tpu.memory_space<vmem>>, %arg6: memref<128x128xbf16, #tpu.memory_space<vmem>>, %arg7: memref<1x128xf32, #tpu.memory_space<vmem>>, %arg8: memref<32x128xf32, #tpu.memory_space<vmem>>) attributes {dimension_semantics = [#tpu.dimension_semantics<parallel>], iteration_bounds = array<i64: 1>, scalar_prefetch = 0 : i64, scratch_operands = 0 : i64, tpu.core_type = #tpu.core_type<tc>, window_params = [{transform_indices = @transform_0, window_bounds = array<i64: 32, 32>}, {pipeline_mode = #tpu.pipeline_mode<synchronous>, transform_indices = @transform_1, window_bounds = array<i64: 32, 128>}, {pipeline_mode = #tpu.pipeline_mode<synchronous>, transform_indices = @transform_2, window_bounds = array<i64: 1, 128>}, {pipeline_mode = #tpu.pipeline_mode<synchronous>, transform_indices = @transform_3, window_bounds = array<i64: 128, 128>}, {pipeline_mode = #tpu.pipeline_mode<synchronous>, transform_indices = @transform_4, window_bounds = array<i64: 1, 128>}, {pipeline_mode = #tpu.pipeline_mode<synchronous>, transform_indices = @transform_5, window_bounds = array<i64: 128, 128>}, {pipeline_mode = #tpu.pipeline_mode<synchronous>, transform_indices = @transform_6, window_bounds = array<i64: 1, 128>}, {transform_indices = @transform_7, window_bounds = array<i64: 32, 128>}]} {
    %c0 = arith.constant 0 : index
    %c0_0 = arith.constant 0 : index
    %0 = vector.load %arg1[%c0, %c0_0] : memref<32x32xf32, #tpu.memory_space<vmem>>, vector<32x32xf32>
    %1 = arith.truncf %0 : vector<32x32xf32> to vector<32x32xbf16>
    %c0_1 = arith.constant 0 : index
    %c0_2 = arith.constant 0 : index
    %2 = vector.load %arg2[%c0_1, %c0_2] : memref<32x128xbf16, #tpu.memory_space<vmem>>, vector<32x128xbf16>
    %cst = arith.constant dense<0.000000e+00> : vector<32x128xf32>
    %3 = tpu.matmul %1, %2, %cst {dimension_numbers = #tpu.dot_dimension_numbers<[1], [0], [0], [1], [0, 0, 1, 1], [], []>} : vector<32x32xbf16>, vector<32x128xbf16>, vector<32x128xf32> -> vector<32x128xf32>
    %c0_3 = arith.constant 0 : index
    %c0_4 = arith.constant 0 : index
    %4 = vector.load %arg3[%c0_3, %c0_4] : memref<1x128xf32, #tpu.memory_space<vmem>>, vector<1x128xf32>
    %5 = vector.broadcast %4 : vector<1x128xf32> to vector<32x128xf32>
    %6 = arith.addf %3, %5 : vector<32x128xf32>
    %cst_5 = arith.constant 0.000000e+00 : f32
    %7 = vector.broadcast %cst_5 : f32 to vector<32x128xf32>
    %8 = arith.maximumf %6, %7 : vector<32x128xf32>
    %9 = arith.truncf %8 : vector<32x128xf32> to vector<32x128xbf16>
    %c0_6 = arith.constant 0 : index
    %c0_7 = arith.constant 0 : index
    %10 = vector.load %arg4[%c0_6, %c0_7] : memref<128x128xbf16, #tpu.memory_space<vmem>>, vector<128x128xbf16>
    %cst_8 = arith.constant dense<0.000000e+00> : vector<32x128xf32>
    %11 = tpu.matmul %9, %10, %cst_8 {dimension_numbers = #tpu.dot_dimension_numbers<[1], [0], [0], [1], [0, 0, 1, 1], [], []>} : vector<32x128xbf16>, vector<128x128xbf16>, vector<32x128xf32> -> vector<32x128xf32>
    %c0_9 = arith.constant 0 : index
    %c0_10 = arith.constant 0 : index
    %12 = vector.load %arg5[%c0_9, %c0_10] : memref<1x128xf32, #tpu.memory_space<vmem>>, vector<1x128xf32>
    %13 = vector.broadcast %12 : vector<1x128xf32> to vector<32x128xf32>
    %14 = arith.addf %11, %13 : vector<32x128xf32>
    %cst_11 = arith.constant 0.000000e+00 : f32
    %15 = vector.broadcast %cst_11 : f32 to vector<32x128xf32>
    %16 = arith.maximumf %14, %15 : vector<32x128xf32>
    %17 = arith.truncf %16 : vector<32x128xf32> to vector<32x128xbf16>
    %c0_12 = arith.constant 0 : index
    %c0_13 = arith.constant 0 : index
    %18 = vector.load %arg6[%c0_12, %c0_13] : memref<128x128xbf16, #tpu.memory_space<vmem>>, vector<128x128xbf16>
    %cst_14 = arith.constant dense<0.000000e+00> : vector<32x128xf32>
    %19 = tpu.matmul %17, %18, %cst_14 {dimension_numbers = #tpu.dot_dimension_numbers<[1], [0], [0], [1], [0, 0, 1, 1], [], []>} : vector<32x128xbf16>, vector<128x128xbf16>, vector<32x128xf32> -> vector<32x128xf32>
    %c0_15 = arith.constant 0 : index
    %c0_16 = arith.constant 0 : index
    %20 = vector.load %arg7[%c0_15, %c0_16] : memref<1x128xf32, #tpu.memory_space<vmem>>, vector<1x128xf32>
    %21 = vector.broadcast %20 : vector<1x128xf32> to vector<32x128xf32>
    %22 = arith.addf %19, %21 : vector<32x128xf32>
    %c0_17 = arith.constant 0 : index
    %c0_18 = arith.constant 0 : index
    %23 = vector.load %arg8[%c0_17, %c0_18] : memref<32x128xf32, #tpu.memory_space<vmem>>, vector<32x128xf32>
    tpu.vector_store %arg8[%c0_17, %c0_18], %22 {strides = array<i32>} : memref<32x128xf32, #tpu.memory_space<vmem>>, vector<32x128xf32>,
    return
  }
  func.func @transform_0(%arg0: i32) -> (i32, i32) {
    %c0_i32 = arith.constant 0 : i32
    %c0_i32_0 = arith.constant 0 : i32
    return %arg0, %c0_i32 : i32, i32
  }
  func.func @transform_1(%arg0: i32) -> (i32, i32) {
    %c0_i32 = arith.constant 0 : i32
    %c0_i32_0 = arith.constant 0 : i32
    %c0_i32_1 = arith.constant 0 : i32
    return %c0_i32, %c0_i32_0 : i32, i32
  }
  func.func @transform_2(%arg0: i32) -> (i32, i32) {
    %c0_i32 = arith.constant 0 : i32
    %c0_i32_0 = arith.constant 0 : i32
    %c0_i32_1 = arith.constant 0 : i32
    return %c0_i32, %c0_i32_0 : i32, i32
  }
  func.func @transform_3(%arg0: i32) -> (i32, i32) {
    %c0_i32 = arith.constant 0 : i32
    %c0_i32_0 = arith.constant 0 : i32
    %c0_i32_1 = arith.constant 0 : i32
    return %c0_i32, %c0_i32_0 : i32, i32
  }
  func.func @transform_4(%arg0: i32) -> (i32, i32) {
    %c0_i32 = arith.constant 0 : i32
    %c0_i32_0 = arith.constant 0 : i32
    %c0_i32_1 = arith.constant 0 : i32
    return %c0_i32, %c0_i32_0 : i32, i32
  }
  func.func @transform_5(%arg0: i32) -> (i32, i32) {
    %c0_i32 = arith.constant 0 : i32
    %c0_i32_0 = arith.constant 0 : i32
    %c0_i32_1 = arith.constant 0 : i32
    return %c0_i32, %c0_i32_0 : i32, i32
  }
  func.func @transform_6(%arg0: i32) -> (i32, i32) {
    %c0_i32 = arith.constant 0 : i32
    %c0_i32_0 = arith.constant 0 : i32
    %c0_i32_1 = arith.constant 0 : i32
    return %c0_i32, %c0_i32_0 : i32, i32
  }
  func.func @transform_7(%arg0: i32) -> (i32, i32) {
    %c0_i32 = arith.constant 0 : i32
    %c0_i32_0 = arith.constant 0 : i32
    return %arg0, %c0_i32 : i32, i32
  }
}

</mosaic_0001>

<bundles_post_ra>
// kernel: dqn_forward.1
= control target key start
LH: loop header
LB: loop body
LE: loop exit
PB: predicated region body
PF: predicated region fallthrough
CT: control target
= control target key end

     0   :  { %12 = vsyncpa [#allocation3], 0  ;;  %s778_s0 = inlined_call_operand.hbm [shape: f32[32,32], index: 0, kind: input, shape index: {}]   ;;  %s779_s1 = inlined_call_operand.hbm [shape: bf16[32,128], index: 1, kind: input, shape index: {}]   ;;  %s780_s2 = inlined_call_operand.vmem [shape: f32[1,128], index: 2, kind: input, shape index: {}]   ;;  %s781_s3 = inlined_call_operand.hbm [shape: bf16[128,128], index: 3, kind: input, shape index: {}]   ;;  %s782_s4 = inlined_call_operand.vmem [shape: f32[1,128], index: 4, kind: input, shape index: {}]   ;;  %s783_s5 = inlined_call_operand.hbm [shape: bf16[128,128], index: 5, kind: input, shape index: {}]   ;;  %s784_s6 = inlined_call_operand.vmem [shape: f32[1,128], index: 6, kind: input, shape index: {}]   ;;  %s785_s7 = inlined_call_operand.vmem [shape: f32[32,128], index: 7, kind: output, shape index: {}]  }
   0x1   :  { %13 = vsyncpa [#allocation5], 0 }
   0x2   :  { %14 = vsyncpa [#allocation8], 0  ;;  %s645_s24 = smov [#allocation4]   ;;  %s551_s28 = scalar_lea.hbm %s779_s1, 256 }
   0x3   :  { %s32_s25 = sshll.u32 %s645_s24, 4  ;;  %p552_p0 = scmp.ne.s32.totalorder %s779_s1, %s551_s28  ;;  %s33_s25 = int_to_ptr.vmem [resolvable:$true] %s32_s25 }
   0x4   :  { %p555_p1 = scmp.lt.u32.totalorder %s551_s28, %s779_s1 }
   0x6   :  { %p557_p2 = pnand %p555_p1, %p552_p0 }
   0x8   :  { %560 = shalt.err (!%p557_p2)
}
   0x9   :  { %s561_s10 = scalar_lea.vmem %s33_s25, 256  ;;  %p566_p4 = scmp.lt.s32.totalorder %s33_s25, %s33_s25 }
   0xa   :  { %p562_p3 = scmp.ne.s32.totalorder %s33_s25, %s561_s10  ;;  %p567_p5 = scmp.lt.s32.totalorder %s561_s10, %s561_s10 }
   0xc   :  { %p568_p6 = por %p567_p5, %p566_p4 }
   0xe   :  { %p569_p7 = pnand %p568_p6, %p562_p3 }
  0x10   :  { %572 = shalt.err (!%p569_p7)
}
  0x11   :  { %s646_s11 = smov 64   ;;  %s647_s12 = smov 4  }
  0x12   :  { %38 = dma.hbm_to_vmem [thread:$0]  %s779_s1, 256, %s33_s25, [#allocation5], %s646_s11, %s646_s11, %s647_s12  }
  0x13   :  { %s648_s15 = smov [#allocation2]   ;;  %s573_s19 = scalar_lea.hbm %s778_s0, 512 }
  0x14   :  { %s20_s16 = sshll.u32 %s648_s15, 4  ;;  %p574_p8 = scmp.ne.s32.totalorder %s778_s0, %s573_s19  ;;  %s21_s16 = int_to_ptr.vmem [resolvable:$true] %s20_s16 }
  0x15   :  { %p577_p9 = scmp.lt.u32.totalorder %s573_s19, %s778_s0 }
  0x17   :  { %p579_p10 = pnand %p577_p9, %p574_p8 }
  0x19   :  { %582 = shalt.err (!%p579_p10)
}
  0x1a   :  { %s583_s24 = scalar_lea.vmem %s21_s16, 512  ;;  %p588_p12 = scmp.lt.s32.totalorder %s21_s16, %s21_s16 }
  0x1b   :  { %p584_p11 = scmp.ne.s32.totalorder %s21_s16, %s583_s24  ;;  %p589_p13 = scmp.lt.s32.totalorder %s583_s24, %s583_s24 }
  0x1d   :  { %p590_p0 = por %p589_p13, %p588_p12 }
  0x1f   :  { %p591_p1 = pnand %p590_p0, %p584_p11 }
  0x21   :  { %594 = shalt.err (!%p591_p1)
}
  0x22   :  { %s649_s1 = smov 128   ;;  %s650_s25 = smov 8  }
  0x23   :  { %26 = dma.hbm_to_vmem [thread:$0]  %s778_s0, 512, %s21_s16, [#allocation3], %s649_s1, %s649_s1, %s650_s25  }
  0x24   :  { %s651_s28 = smov [#allocation6]   ;;  %s652_s30 = smov [#allocation7]  }
  0x25   :  { %s46_s29 = sshll.u32 %s651_s28, 4  ;;  %s60_s8 = sshll.u32 %s652_s30, 4  ;;  %s47_s29 = int_to_ptr.vmem [resolvable:$true] %s46_s29  ;;  %s720_s8 = int_to_ptr.vmem [resolvable:$true] %s60_s8 }
  0x26   :  { %s595_s13 = scalar_lea.hbm %s781_s3, 1024 }
  0x27   :  { %p596_p2 = scmp.ne.s32.totalorder %s781_s3, %s595_s13  ;;  %p599_p3 = scmp.lt.u32.totalorder %s595_s13, %s781_s3 }
  0x29   :  { %p601_p4 = pnand %p599_p3, %p596_p2 }
  0x2b   :  { %604 = shalt.err (!%p601_p4)
}
  0x2c   :  { %s605_s0 = scalar_lea.vmem %s47_s29, 1024  ;;  %p610_p6 = scmp.lt.s32.totalorder %s47_s29, %s47_s29 }
  0x2d   :  { %p606_p5 = scmp.ne.s32.totalorder %s47_s29, %s605_s0  ;;  %p611_p7 = scmp.lt.s32.totalorder %s605_s0, %s605_s0 }
  0x2f   :  { %p612_p8 = por %p611_p7, %p610_p6 }
  0x31   :  { %p613_p9 = pnand %p612_p8, %p606_p5 }
  0x33   :  { %616 = shalt.err (!%p613_p9)
}
  0x34   :  { %52 = dma.hbm_to_vmem [thread:$0]  %s781_s3, 1024, %s47_s29, [#allocation5], %s646_s11, %s646_s11, %s647_s12  }
  0x35   :  { %s617_s22 = scalar_lea.hbm %s783_s5, 1024 }
  0x36   :  { %p618_p10 = scmp.ne.s32.totalorder %s783_s5, %s617_s22  ;;  %p621_p11 = scmp.lt.u32.totalorder %s617_s22, %s783_s5 }
  0x38   :  { %p623_p12 = pnand %p621_p11, %p618_p10 }
  0x3a   :  { %626 = shalt.err (!%p623_p12)
}
  0x3b   :  { %s627_s26 = scalar_lea.vmem %s720_s8, 1024  ;;  %p632_p0 = scmp.lt.s32.totalorder %s720_s8, %s720_s8 }
  0x3c   :  { %p628_p13 = scmp.ne.s32.totalorder %s720_s8, %s627_s26  ;;  %p633_p1 = scmp.lt.s32.totalorder %s627_s26, %s627_s26 }
  0x3e   :  { %p634_p2 = por %p633_p1, %p632_p0 }
  0x40   :  { %p635_p3 = pnand %p634_p2, %p628_p13 }
  0x42   :  { %638 = shalt.err (!%p635_p3)
}
  0x43   :  { %66 = dma.hbm_to_vmem [thread:$0]  %s783_s5, 1024, %s720_s8, [#allocation8], %s646_s11, %s646_s11, %s647_s12  }
  0x44   :  { %639 = dma.done.wait [#allocation3], 512  }
  0x45   :  { %640 = vsyncadd [#allocation3], 4294966784 }
  0x46   :  { %641 = dma.done.wait [#allocation5], 1280  }
  0x47   :  { %642 = vsyncadd [#allocation5], 4294966016 }
  0x48   :  { %643 = dma.done.wait [#allocation8], 1024  }
  0x49   :  { %644 = vsyncadd [#allocation8], 4294966272  ;;  %v533_v0 = vld [vmem:[#allocation4] sm:$0xff]   ;;  %v534_v1 = vld [vmem:[#allocation4 + $0x8] sm:$0xff]   ;;  %vm111_vm0 = vcmask 261120  }
  0x4a   :  { %477 = vmatprep.subr.bf16.mxu0 %v533_v0  ;;  %v82_v2 = vld [vmem:[#allocation2] sm:$0xff]  ;;  %v83_v3 = vld [vmem:[#allocation2 + $0x8] sm:$0xff]  ;;  %v84_v4 = vld [vmem:[#allocation2 + $0x10] sm:$0xff] }
  0x4b   :  { %478 = vmatpush3.bf16.msra.mxu0 %v533_v0  ;;  %v86_v5 = vpack.c.bf16 %v83_v3, %v82_v2  ;;  %v85_v6 = vld [vmem:[#allocation2 + $0x18] sm:$0xff]  ;;  %v535_v7 = vld [vmem:[#allocation6] sm:$0xff]   ;;  %v537_v10 = vld [vmem:[#allocation6 + $0x10] sm:$0xff]  }
  0x4c   :  { %479 = vmatprep.subr.bf16.mxu0 %v534_v1  ;;  %v536_v8 = vld [vmem:[#allocation6 + $0x8] sm:$0xff]   ;;  %v87_v9 = vpack.c.bf16 %v85_v6, %v84_v4  ;;  %485 = vmatprep.subr.bf16.mxu1 %v535_v7  ;;  %v538_v11 = vld [vmem:[#allocation6 + $0x18] sm:$0xff]   ;;  %v539_v12 = vld [vmem:[#allocation6 + $0x20] sm:$0xff]  }
  0x4d   :  { %481 = vmatprep.mubr.msk.bf16.mxu0 %vm111_vm0, %v86_v5  ;;  %486 = vmatpush3.bf16.msra.mxu1 %v535_v7  ;;  %v540_v13 = vld [vmem:[#allocation6 + $0x28] sm:$0xff]   ;;  %v541_v14 = vld [vmem:[#allocation6 + $0x30] sm:$0xff]   ;;  %v542_v15 = vld [vmem:[#allocation6 + $0x38] sm:$0xff]  }
  0x4e   :  { %487 = vmatprep.subr.bf16.mxu1 %v536_v8  ;;  %v543_v16 = vld [vmem:[#allocation7] sm:$0xff]   ;;  %v544_v17 = vld [vmem:[#allocation7 + $0x8] sm:$0xff]   ;;  %v545_v18 = vld [vmem:[#allocation7 + $0x10] sm:$0xff]  }
  0x4f   :  { %480 = vmatpush3.bf16.msra.mxu0 %v534_v1  ;;  %v546_v19 = vld [vmem:[#allocation7 + $0x18] sm:$0xff]   ;;  %v547_v20 = vld [vmem:[#allocation7 + $0x20] sm:$0xff]   ;;  %v548_v21 = vld [vmem:[#allocation7 + $0x28] sm:$0xff]  }
  0x50   :  { %505 = vmatprep.subr.bf16.mxu0 %v543_v16  ;;  %v430_v22 = vld [vmem:[%s780_s2] ss:$0 sm:$0xff]  ;;  %v550_v38 = vld [vmem:[#allocation7 + $0x38] sm:$0xff]  }
  0x51   :  { %488 = vmatpush3.bf16.msra.mxu1 %v536_v8  ;;  %v549_v37 = vld [vmem:[#allocation7 + $0x30] sm:$0xff]  }
  0x52   :  { %482 = vmatmul.mubr.msk.bf16.vlgmr.msra.gmra.mrb[0].mxu0 %vm111_vm0, %v87_v9  ;;  %489 = vmatprep.subr.bf16.mxu1 %v537_v10  ;;  %v435_v39 = vld [vmem:[%s782_s4] ss:$0 sm:$0xff] }
  0x53   :  { %506 = vmatpush3.bf16.msra.mxu0 %v543_v16  ;;  %v444_v54 = vld [vmem:[%s784_s6] ss:$0 sm:$0xff] }
  0x54   :  { %507 = vmatprep.subr.bf16.mxu0 %v544_v17 }
  0x55   :  { %490 = vmatpush3.bf16.msra.mxu1 %v537_v10 }
  0x56   :  { %491 = vmatprep.subr.bf16.mxu1 %v538_v11 }
  0x57   :  { %508 = vmatpush3.bf16.msra.mxu0 %v544_v17 }
  0x58   :  { %509 = vmatprep.subr.bf16.mxu0 %v545_v18 }
  0x59   :  { %492 = vmatpush3.bf16.msra.mxu1 %v538_v11 }
  0x5a   :  { %493 = vmatprep.subr.bf16.mxu1 %v539_v12 }
  0x5b   :  { %510 = vmatpush3.bf16.msra.mxu0 %v545_v18 }
  0x5c   :  { %511 = vmatprep.subr.bf16.mxu0 %v546_v19 }
  0x5d   :  { %494 = vmatpush3.bf16.msra.mxu1 %v539_v12 }
  0x5e   :  { %495 = vmatprep.subr.bf16.mxu1 %v540_v13 }
  0x5f   :  { %512 = vmatpush3.bf16.msra.mxu0 %v546_v19 }
  0x60   :  { %513 = vmatprep.subr.bf16.mxu0 %v547_v20 }
  0x61   :  { %496 = vmatpush3.bf16.msra.mxu1 %v540_v13 }
  0x62   :  { %497 = vmatprep.subr.bf16.mxu1 %v541_v14 }
  0x63   :  { %514 = vmatpush3.bf16.msra.mxu0 %v547_v20 }
  0x64   :  { %515 = vmatprep.subr.bf16.mxu0 %v548_v21 }
  0x65   :  { %498 = vmatpush3.bf16.msra.mxu1 %v541_v14 }
  0x66   :  { %499 = vmatprep.subr.bf16.mxu1 %v542_v15 }
  0x67   :  { %516 = vmatpush3.bf16.msra.mxu0 %v548_v21 }
  0x68   :  { %517 = vmatprep.subr.bf16.mxu0 %v549_v37 }
  0x69   :  { %500 = vmatpush3.bf16.msra.mxu1 %v542_v15 }
  0x6b   :  { %518 = vmatpush3.bf16.msra.mxu0 %v549_v37 }
  0x6c   :  { %519 = vmatprep.subr.bf16.mxu0 %v550_v38 }
  0x6f   :  { %520 = vmatpush3.bf16.msra.mxu0 %v550_v38 }
 0x125   :  { %v483_v23 = vpop.f32.mrb[0].mxu0 }
 0x126   :  { %v161_v24 = vadd.f32 %v483_v23, %v430_v22  ;;  %v152_v25 = vpop.f32.mrb[1].mxu0 }
 0x127   :  { %v153_v26 = vadd.f32 %v430_v22, %v152_v25  ;;  %v484_v27 = vpop.f32.mrb[2].mxu0 }
 0x128   :  { %v164_v28 = vadd.f32 %v484_v27, %v430_v22  ;;  %v155_v29 = vpop.f32.mrb[3].mxu0  ;;  %v169_v31 = vmax.f32 %v161_v24, 0.0 }
 0x129   :  { %v156_v30 = vadd.f32 %v430_v22, %v155_v29  ;;  %v167_v33 = vmax.f32 %v153_v26, 0.0 }
 0x12a   :  { %v170_v32 = vmax.f32 %v164_v28, 0.0 }
 0x12b   :  { %v168_v34 = vmax.f32 %v156_v30, 0.0 }
 0x12c   :  { %v172_v35 = vpack.c.bf16 %v170_v32, %v169_v31 }
 0x12d   :  { %v171_v36 = vpack.c.bf16 %v168_v34, %v167_v33 }
 0x12f   :  { %501 = vmatprep.mubr.bf16.mxu1 %v171_v36 }
 0x130   :  { %502 = vmatmul.mubr.bf16.vlgmr.msra.gmra.mrb[0].mxu1 %v172_v35 }
 0x203   :  { %v503_v40 = vpop.f32.mrb[0].mxu1 }
 0x204   :  { %v287_v41 = vadd.f32 %v503_v40, %v435_v39  ;;  %v278_v42 = vpop.f32.mrb[1].mxu1 }
 0x205   :  { %v279_v43 = vadd.f32 %v435_v39, %v278_v42  ;;  %v504_v44 = vpop.f32.mrb[2].mxu1 }
 0x206   :  { %v290_v45 = vadd.f32 %v504_v44, %v435_v39  ;;  %v281_v46 = vpop.f32.mrb[3].mxu1  ;;  %v295_v48 = vmax.f32 %v287_v41, 0.0 }
 0x207   :  { %v282_v47 = vadd.f32 %v435_v39, %v281_v46  ;;  %v293_v50 = vmax.f32 %v279_v43, 0.0 }
 0x208   :  { %v296_v49 = vmax.f32 %v290_v45, 0.0 }
 0x209   :  { %v294_v51 = vmax.f32 %v282_v47, 0.0 }
 0x20a   :  { %v298_v52 = vpack.c.bf16 %v296_v49, %v295_v48 }
 0x20b   :  { %v297_v53 = vpack.c.bf16 %v294_v51, %v293_v50 }
 0x20d   :  { %521 = vmatprep.mubr.bf16.mxu0 %v297_v53 }
 0x20e   :  { %522 = vmatmul.mubr.bf16.vlgmr.msra.gmra.mrb[4].mxu0 %v298_v52 }
 0x2e1   :  { %v523_v55 = vpop.f32.mrb[4].mxu0 }
 0x2e2   :  { %v413_v56 = vadd.f32 %v523_v55, %v444_v54  ;;  %v404_v57 = vpop.f32.mrb[5].mxu0 }
 0x2e3   :  { %v405_v58 = vadd.f32 %v444_v54, %v404_v57  ;;  %v524_v59 = vpop.f32.mrb[6].mxu0 }
 0x2e4   :  { %421 = vst [vmem:[%s785_s7 + $0x10] sm:$0xff] %v413_v56  ;;  %v416_v60 = vadd.f32 %v524_v59, %v444_v54  ;;  %v407_v61 = vpop.f32.mrb[7].mxu0 }
 0x2e5   :  { %419 = vst [vmem:[%s785_s7] sm:$0xff] %v405_v58  ;;  %v408_v62 = vadd.f32 %v444_v54, %v407_v61 }
 0x2e6   :  { %422 = vst [vmem:[%s785_s7 + $0x18] sm:$0xff] %v416_v60 }
 0x2e7   :  { %420 = vst [vmem:[%s785_s7 + $0x8] sm:$0xff] %v408_v62 }
 0x2e8   :  { %427 = vsyncpa [#allocation3], 1 }
 0x2e9   :  { %428 = vsyncpa [#allocation5], 1 }
 0x2ea   :  { %429 = vsyncpa [#allocation8], 1 }

</bundles_post_ra>
